<compile_context>
chip_gen: v6e
topology: v6e:2x2x1
jax: 0.10.0
libtpu: 0.0.40
codegen_flags: <defaults>
</compile_context>

<pallas_src>
import functools

import jax
import jax.numpy as jnp
from jax.experimental import pallas as pl
from jax.experimental.pallas import tpu as pltpu


def _node_ce_kernel(pred_ref, tgt_ref, out_ref, loss_acc, *,
                    n_nodes, tile_n, tiles_per_split):
    """One step: cross-entropy over a [C, tile_n] block (classes x nodes)."""
    s = pl.program_id(0)                        # split axis ("parallel")
    t = pl.program_id(1)                        # node-tile axis (reduction)

    @pl.when(t == 0)
    def _():
        loss_acc[...] = jnp.zeros_like(loss_acc)

    logits = pred_ref[...].astype(jnp.float32)   # [C, TN]
    tgt = tgt_ref[...]                           # [1, TN] int32 (-1 == masked out)

    # Per-lane (per-node) validity: masked nodes carry target == -1; the ragged
    # tail / clamped duplicate tiles are cut off by the global node index.
    node0 = (s * tiles_per_split + t) * tile_n
    lane = jax.lax.broadcasted_iota(jnp.int32, tgt.shape, 1)
    valid = (tgt >= 0) & ((node0 + lane) < n_nodes)

    # Numerically stable CE over the class (sublane) axis.
    m = jnp.max(logits, axis=0, keepdims=True)                     # [1, TN]
    shifted = logits - m                                           # [C, TN]
    sum_exp = jnp.sum(jnp.exp(shifted), axis=0, keepdims=True)     # [1, TN]
    # Target gather: sublane one-hot *select* on the already-shifted logits.
    # The class iota is regenerated each step: ~1 VALU op per 1024 elements,
    # well under the HBM-roofline budget; a persistent scratch would cost
    # C*tile_n*4 bytes of VMEM better spent on bigger node tiles.
    cls = jax.lax.broadcasted_iota(jnp.int32, logits.shape, 0)     # [C, TN]
    picked = jnp.sum(jnp.where(cls == tgt, shifted, 0.0), axis=0, keepdims=True)
    ce = jnp.log(sum_exp) - picked                                 # [1, TN]
    # Out-of-range targets (>= C) give picked == 0 (finite but wrong loss)
    # instead of erroring like F.cross_entropy -- documented behaviour.

    # Lane-wise accumulate; invalid lanes (incl. NaN/Inf from OOB garbage in a
    # partial last block) contribute exactly 0 via the select.
    loss_acc[...] += jnp.where(valid, ce, 0.0)

    @pl.when(t == pl.num_programs(1) - 1)
    def _():
        # Single cross-lane reduction per split, once, in the epilogue.
        out_ref[...] = jnp.zeros_like(out_ref) + jnp.sum(loss_acc[...])


def _round_up(x, m):
    return (x + m - 1) // m * m


@functools.partial(
    jax.jit, static_argnames=("reduction", "classes_first", "num_splits", "tile_n"))
def node_classification_loss(pred, target, mask=None, *, reduction="mean",
                             classes_first=False, num_splits=1, tile_n=None):
    """Masked softmax cross-entropy over nodes (NodeClassificationLoss.forward).

    pred:   [num_nodes, num_classes] logits (f32 or bf16), or
            [num_classes, num_nodes] with classes_first=True (zero-copy fast path).
    target: [num_nodes] int class ids.
    mask:   optional [num_nodes] bool/float node mask.
    reduction: 'mean' (default) or 'sum'.
    num_splits: partial-sum blocks on the leading "parallel" grid axis; keep 1
            on single-TensorCore chips (v5e/v6e), try 2 on v7x.
    """
    if reduction not in ("mean", "sum"):
        # TODO(synk): reduction='none' needs a dynamically-shaped per-node output
        # (PyTorch boolean-mask indexing); not expressible with static shapes.
        raise NotImplementedError(f"reduction={reduction!r} not supported")

    if classes_first:
        C, N = pred.shape
        pred_cn = pred                         # already lane-dense over nodes
    else:
        N, C = pred.shape
        # TODO(synk): this transpose is the only remaining extra pass over pred
        # (~2x extra HBM bytes).  Callers that can produce the classifier head
        # as [C, D] @ [D, N] should pass it with classes_first=True to skip it.
        pred_cn = pred.T

    # Fold the mask into the target (-1 == excluded) and compute the 'mean'
    # denominator in the wrapper -> no mask DMA stream, no mask accumulator.
    tgt = target.astype(jnp.int32)
    if mask is not None:
        tgt = jnp.where(mask.astype(bool), tgt, -1)
        denom = jnp.sum(mask.astype(jnp.float32))
    else:
        denom = jnp.asarray(N, dtype=jnp.float32)
    tgt2d = tgt[None, :]                       # [1, N], nodes on the lane axis

    # --- tile sizing: biggest node tile that fits a ~12 MiB VMEM budget ------
    # per-node VMEM bytes: pred double-buffer (sublane-padded) + target
    # double-buffer ((1, tile_n) int32 pads to 8 sublanes) + loss accumulator.
    if tile_n is None:
        item = jnp.dtype(pred.dtype).itemsize
        c_pad = _round_up(C, max(1, 32 // item))      # 8 for f32, 16 for bf16
        per_node = 2 * c_pad * item + 2 * 8 * 4 + 8 * 4
        budget = 12 * 1024 * 1024
        tile_n = max(128, (budget // per_node) // 128 * 128)
    tile_n = max(128, (min(int(tile_n), _round_up(N, 128)) // 128) * 128)

    n_tiles = pl.cdiv(N, tile_n)
    num_splits = max(1, min(int(num_splits), n_tiles))
    tiles_per_split = pl.cdiv(n_tiles, num_splits)
    last_tile = n_tiles - 1
    need_clamp = num_splits * tiles_per_split != n_tiles

    def _tile_idx(s, t):
        idx = s * tiles_per_split + t
        # over-run tiles of the last split re-read a valid tile; their lanes are
        # fully masked in-kernel via the global node index (no OOB DMA).
        return jnp.minimum(idx, last_tile) if need_clamp else idx

    kernel = functools.partial(_node_ce_kernel, n_nodes=N, tile_n=tile_n,
                               tiles_per_split=tiles_per_split)

    partials = pl.pallas_call(
        kernel,
        out_shape=jax.ShapeDtypeStruct((num_splits * 8, 128), jnp.float32),
        grid_spec=pltpu.PrefetchScalarGridSpec(
            num_scalar_prefetch=0,
            grid=(num_splits, tiles_per_split),
            in_specs=[
                pl.BlockSpec((C, tile_n), lambda s, t: (0, _tile_idx(s, t))),
                pl.BlockSpec((1, tile_n), lambda s, t: (0, _tile_idx(s, t))),
            ],
            out_specs=pl.BlockSpec((8, 128), lambda s, t: (s, 0)),
            scratch_shapes=[pltpu.VMEM((1, tile_n), jnp.float32)],  # lane-wise loss acc
        ),
        compiler_params=pltpu.CompilerParams(
            # split axis may shard across v7x's two TensorCores; the node-tile
            # axis is the accumulating reduction axis.
            # TODO(synk): if xprof shows one v7x core idle, switch the leading
            # axis to pltpu.CORE_PARALLEL (or restructure with pl.core_map).
            dimension_semantics=("parallel", "arbitrary"),
            vmem_limit_bytes=32 * 1024 * 1024,
        ),
    )(pred_cn, tgt2d)

    loss_sum = jnp.sum(partials.reshape(num_splits, 8, 128)[:, 0, 0])
    if reduction == "sum":
        return loss_sum
    # 'mean': divide by number of selected nodes (all-False mask -> nan,
    # matching PyTorch on an empty selection).
    return loss_sum / denom


def _reference_loss(pred, target, mask=None, reduction="mean"):
    # pure-JAX reference of F.cross_entropy(pred[mask], target[mask], reduction)
    w = (mask.astype(jnp.float32) if mask is not None
         else jnp.ones(pred.shape[0], dtype=jnp.float32))
    logp = jax.nn.log_softmax(pred.astype(jnp.float32), axis=-1)
    nll = -jnp.take_along_axis(logp, target[:, None].astype(jnp.int32), axis=-1)[:, 0]
    if reduction == "mean":
        return jnp.sum(nll * w) / jnp.sum(w)
    return jnp.sum(nll * w)


if __name__ == "__main__":
    key = jax.random.PRNGKey(0)
    k1, k2, k3 = jax.random.split(key, 3)

    N, C = 512, 8  # num_nodes, num_classes (small demo shapes)
    pred = jax.random.normal(k1, (N, C), dtype=jnp.float32)
    target = jax.random.randint(k2, (N,), 0, C, dtype=jnp.int32)
    mask = jax.random.bernoulli(k3, 0.75, (N,))

    # unmasked, reduction='mean'
    loss = node_classification_loss(pred, target)
    jax.block_until_ready(loss)
    ref = _reference_loss(pred, target)
    assert jnp.allclose(loss, ref, atol=1e-5, rtol=1e-5), (loss, ref)

    # masked, reduction='mean'
    loss_m = node_classification_loss(pred, target, mask)
    jax.block_until_ready(loss_m)
    ref_m = _reference_loss(pred, target, mask)
    assert jnp.allclose(loss_m, ref_m, atol=1e-5, rtol=1e-5), (loss_m, ref_m)

    # masked, reduction='sum'
    loss_s = node_classification_loss(pred, target, mask, reduction="sum")
    jax.block_until_ready(loss_s)
    ref_s = _reference_loss(pred, target, mask, reduction="sum")
    assert jnp.allclose(loss_s, ref_s, atol=1e-4, rtol=1e-5), (loss_s, ref_s)

    # zero-copy fast path: pred already in [C, N] layout
    loss_t = node_classification_loss(pred.T, target, mask, classes_first=True)
    jax.block_until_ready(loss_t)
    assert jnp.allclose(loss_t, loss_m, atol=1e-6, rtol=1e-6), (loss_t, loss_m)

    # ragged N (not a multiple of the 128-lane tile): exercises the partial
    # last block + in-kernel node-index masking (no wrapper-side padding).
    N2 = 100
    pred2 = jax.random.normal(k1, (N2, C), dtype=jnp.float32)
    target2 = jax.random.randint(k2, (N2,), 0, C, dtype=jnp.int32)
    loss2 = node_classification_loss(pred2, target2)
    jax.block_until_ready(loss2)
    ref2 = _reference_loss(pred2, target2)
    assert jnp.allclose(loss2, ref2, atol=1e-5, rtol=1e-5), (loss2, ref2)

    print("KERNEL_OK")
</pallas_src>

<mosaic_0001>
module attributes {stable_mosaic.version = 11 : i64} {
  func.func @_node_ce_kernel(%arg0: i32, %arg1: i32, %arg2: memref<8x512xf32, #tpu.memory_space<vmem>>, %arg3: memref<1x512xi32, #tpu.memory_space<vmem>>, %arg4: memref<8x128xf32, #tpu.memory_space<vmem>>, %arg5: memref<1x512xf32, #tpu.memory_space<vmem>>) attributes {dimension_semantics = [#tpu.dimension_semantics<parallel>, #tpu.dimension_semantics<arbitrary>], iteration_bounds = array<i64: 1, 1>, scalar_prefetch = 0 : i64, scratch_operands = 1 : i64, tpu.core_type = #tpu.core_type<tc>, window_params = [{transform_indices = @transform_0, window_bounds = array<i64: 8, 512>}, {transform_indices = @transform_1, window_bounds = array<i64: 1, 512>}, {transform_indices = @transform_2, window_bounds = array<i64: 8, 128>}]} {
    %c0_i32 = arith.constant 0 : i32
    %0 = arith.cmpi eq, %arg1, %c0_i32 : i32
    %1 = arith.extui %0 : i1 to i32
    %c0_i32_0 = arith.constant 0 : i32
    %2 = arith.cmpi ne, %1, %c0_i32_0 : i32
    scf.if %2 {
      %cst_16 = arith.constant 0.000000e+00 : f32
      %40 = vector.broadcast %cst_16 : f32 to vector<1x512xf32>
      %c0_17 = arith.constant 0 : index
      %c0_18 = arith.constant 0 : index
      %41 = vector.load %arg5[%c0_17, %c0_18] : memref<1x512xf32, #tpu.memory_space<vmem>>, vector<1x512xf32>
      tpu.vector_store %arg5[%c0_17, %c0_18], %40 {strides = array<i32>} : memref<1x512xf32, #tpu.memory_space<vmem>>, vector<1x512xf32>,
    } else {
    }
    %c0 = arith.constant 0 : index
    %c0_1 = arith.constant 0 : index
    %3 = vector.load %arg2[%c0, %c0_1] : memref<8x512xf32, #tpu.memory_space<vmem>>, vector<8x512xf32>
    %c0_2 = arith.constant 0 : index
    %c0_3 = arith.constant 0 : index
    %4 = vector.load %arg3[%c0_2, %c0_3] : memref<1x512xi32, #tpu.memory_space<vmem>>, vector<1x512xi32>
    %c1_i32 = arith.constant 1 : i32
    %5 = arith.muli %arg0, %c1_i32 : i32
    %6 = arith.addi %5, %arg1 : i32
    %c512_i32 = arith.constant 512 : i32
    %7 = arith.muli %6, %c512_i32 : i32
    %8 = tpu.iota {dimensions = array<i32: 1>} : vector<1x512xi32>
    %c0_i32_4 = arith.constant 0 : i32
    %9 = vector.broadcast %c0_i32_4 : i32 to vector<1x512xi32>
    %10 = arith.cmpi sge, %4, %9 : vector<1x512xi32>
    %11 = vector.broadcast %7 : i32 to vector<1x512xi32>
    %12 = arith.addi %11, %8 : vector<1x512xi32>
    %c512_i32_5 = arith.constant 512 : i32
    %13 = vector.broadcast %c512_i32_5 : i32 to vector<1x512xi32>
    %14 = arith.cmpi slt, %12, %13 : vector<1x512xi32>
    %15 = arith.andi %10, %14 : vector<1x512xi1>
    %cst = arith.constant dense<0xFF800000> : vector<512xf32>
    %16 = vector.multi_reduction <maximumf>, %3, %cst [0] : vector<8x512xf32> to vector<512xf32>
    %17 = vector.shape_cast %16 : vector<512xf32> to vector<1x512xf32>
    %18 = vector.broadcast %17 : vector<1x512xf32> to vector<8x512xf32>
    %19 = arith.subf %3, %18 : vector<8x512xf32>
    %20 = math.exp %19 : vector<8x512xf32>
    %cst_6 = arith.constant dense<0.000000e+00> : vector<512xf32>
    %21 = vector.multi_reduction <add>, %20, %cst_6 [0] : vector<8x512xf32> to vector<512xf32>
    %22 = vector.shape_cast %21 : vector<512xf32> to vector<1x512xf32>
    %23 = tpu.iota {dimensions = array<i32: 0>} : vector<8x512xi32>
    %24 = vector.broadcast %4 : vector<1x512xi32> to vector<8x512xi32>
    %25 = arith.cmpi eq, %23, %24 : vector<8x512xi32>
    %cst_7 = arith.constant 0.000000e+00 : f32
    %26 = vector.broadcast %cst_7 : f32 to vector<8x512xf32>
    %27 = arith.select %25, %19, %26 : vector<8x512xi1>, vector<8x512xf32>
    %cst_8 = arith.constant dense<0.000000e+00> : vector<512xf32>
    %28 = vector.multi_reduction <add>, %27, %cst_8 [0] : vector<8x512xf32> to vector<512xf32>
    %29 = vector.shape_cast %28 : vector<512xf32> to vector<1x512xf32>
    %30 = math.log %22 : vector<1x512xf32>
    %31 = arith.subf %30, %29 : vector<1x512xf32>
    %c0_9 = arith.constant 0 : index
    %c0_10 = arith.constant 0 : index
    %32 = vector.load %arg5[%c0_9, %c0_10] : memref<1x512xf32, #tpu.memory_space<vmem>>, vector<1x512xf32>
    %cst_11 = arith.constant 0.000000e+00 : f32
    %33 = vector.broadcast %cst_11 : f32 to vector<1x512xf32>
    %34 = arith.select %15, %31, %33 : vector<1x512xi1>, vector<1x512xf32>
    %35 = arith.addf %32, %34 : vector<1x512xf32>
    %c0_12 = arith.constant 0 : index
    %c0_13 = arith.constant 0 : index
    %36 = vector.load %arg5[%c0_12, %c0_13] : memref<1x512xf32, #tpu.memory_space<vmem>>, vector<1x512xf32>
    tpu.vector_store %arg5[%c0_12, %c0_13], %35 {strides = array<i32>} : memref<1x512xf32, #tpu.memory_space<vmem>>, vector<1x512xf32>,
    %c0_i32_14 = arith.constant 0 : i32
    %37 = arith.cmpi eq, %arg1, %c0_i32_14 : i32
    %38 = arith.extui %37 : i1 to i32
    %c0_i32_15 = arith.constant 0 : i32
    %39 = arith.cmpi ne, %38, %c0_i32_15 : i32
    scf.if %39 {
      %cst_16 = arith.constant 0.000000e+00 : f32
      %40 = vector.broadcast %cst_16 : f32 to vector<8x128xf32>
      %c0_17 = arith.constant 0 : index
      %c0_18 = arith.constant 0 : index
      %41 = vector.load %arg5[%c0_17, %c0_18] : memref<1x512xf32, #tpu.memory_space<vmem>>, vector<1x512xf32>
      %42 = vector.shape_cast %41 : vector<1x512xf32> to vector<1x1x512xf32>
      %cst_19 = arith.constant dense<0.000000e+00> : vector<1xf32>
      %43 = vector.multi_reduction <add>, %42, %cst_19 [1, 2] : vector<1x1x512xf32> to vector<1xf32>
      %44 = vector.shape_cast %43 : vector<1xf32> to vector<1x1x1xf32>
      %45 = vector.extract %44[0, 0, 0] : f32 from vector<1x1x1xf32>
      %46 = vector.broadcast %45 : f32 to vector<8x128xf32>
      %47 = arith.addf %40, %46 : vector<8x128xf32>
      %c0_20 = arith.constant 0 : index
      %c0_21 = arith.constant 0 : index
      %48 = vector.load %arg4[%c0_20, %c0_21] : memref<8x128xf32, #tpu.memory_space<vmem>>, vector<8x128xf32>
      tpu.vector_store %arg4[%c0_20, %c0_21], %47 {strides = array<i32>} : memref<8x128xf32, #tpu.memory_space<vmem>>, vector<8x128xf32>,
    } else {
    }
    return
  }
  func.func @transform_0(%arg0: i32, %arg1: i32) -> (i32, i32) {
    %c1_i32 = arith.constant 1 : i32
    %0 = arith.muli %arg0, %c1_i32 : i32
    %1 = arith.addi %0, %arg1 : i32
    %c0_i32 = arith.constant 0 : i32
    %c0_i32_0 = arith.constant 0 : i32
    return %c0_i32, %1 : i32, i32
  }
  func.func @transform_1(%arg0: i32, %arg1: i32) -> (i32, i32) {
    %c1_i32 = arith.constant 1 : i32
    %0 = arith.muli %arg0, %c1_i32 : i32
    %1 = arith.addi %0, %arg1 : i32
    %c0_i32 = arith.constant 0 : i32
    %c0_i32_0 = arith.constant 0 : i32
    return %c0_i32, %1 : i32, i32
  }
  func.func @transform_2(%arg0: i32, %arg1: i32) -> (i32, i32) {
    %c0_i32 = arith.constant 0 : i32
    %c0_i32_0 = arith.constant 0 : i32
    return %arg0, %c0_i32 : i32, i32
  }
}

</mosaic_0001>

<bundles_post_ra>
// kernel: node_classification_loss.1
= control target key start
LH: loop header
LB: loop body
LE: loop exit
PB: predicated region body
PF: predicated region fallthrough
CT: control target
= control target key end

     0   :  { %7 = vsyncpa [#allocation4], 0  ;;  %s365_s9 = smov [#allocation3]   ;;  %s435_s0 = inlined_call_operand.hbm [shape: f32[8,512], index: 0, kind: input, shape index: {}]   ;;  %s436_s1 = inlined_call_operand.vmem [shape: s32[1,512], index: 1, kind: input, shape index: {}]   ;;  %s437_s2 = inlined_call_operand.vmem [shape: f32[8,128], index: 2, kind: output, shape index: {}]  }
   0x1   :  { %s18_s10 = sshll.u32 %s365_s9, 4  ;;  %s19_s10 = int_to_ptr.vmem [resolvable:$true] %s18_s10 }
   0x2   :  { %s351_s11 = scalar_lea.vmem %s19_s10, 512  ;;  %p356_p1 = scmp.lt.s32.totalorder %s19_s10, %s19_s10 }
   0x3   :  { %p352_p0 = scmp.ne.s32.totalorder %s19_s10, %s351_s11  ;;  %p357_p2 = scmp.lt.s32.totalorder %s351_s11, %s351_s11 }
   0x5   :  { %p358_p3 = por %p357_p2, %p356_p1 }
   0x7   :  { %p359_p4 = pnand %p358_p3, %p352_p0 }
   0x9   :  { %362 = shalt.err (!%p359_p4)
}
   0xa   :  { %21 = dma.hbm_to_vmem [thread:$0]  %s435_s0, 512, %s19_s10, [#allocation4]  }
   0xb   :  { %363 = dma.done.wait [#allocation4], 512  }
   0xc   :  { %364 = vsyncadd [#allocation4], 4294966784  ;;  %v52_v0 = vlaneseq  ;;  %v366_v2 = vmov 0.0   ;;  %v57_v3 = vld [vmem:[#allocation3] sm:$0xff]  ;;  %v58_v4 = vld [vmem:[#allocation3 + $0x8] sm:$0xff]  ;;  %vm293_vm8 = vcmask 1040384  }
   0xd   :  { %v59_v5 = vld [vmem:[#allocation3 + $0x10] sm:$0xff]  ;;  %v60_v6 = vld [vmem:[#allocation3 + $0x18] sm:$0xff]  ;;  %v109_v7 = vrot.slane %v57_v3, 4  ;;  %v115_v8 = vrot.slane %v58_v4, 4 }
   0xe   :  { %vm387_vm0 = vcmp.lt.s32.totalorder %v52_v0, 512  ;;  %v121_v9 = vrot.slane %v59_v5, 4  ;;  %v127_v10 = vrot.slane %v60_v6, 4  ;;  %v393_v39 = vshrl.u32 %v52_v0, 7  ;;  %v399_v41 = vld [vmem:[%s436_s1] sm:$0xf] }
   0xf   :  { %56 = vst.msk [vmem:[#allocation2] sm:$0xf] %vm387_vm0, %v366_v2  ;;  %v110_v11 = vmax.f32 %v57_v3, %v109_v7  ;;  %v116_v12 = vmax.f32 %v58_v4, %v115_v8  ;;  %vm69_vm5 = vcmp.ge.s32.totalorder %v399_v41, 0 }
  0x10   :  { %v122_v13 = vmax.f32 %v59_v5, %v121_v9  ;;  %v128_v14 = vmax.f32 %v60_v6, %v127_v10  ;;  %v173_v40 = vsub.s32 0, %v393_v39  ;;  %v177_v42 = vsub.s32 1, %v393_v39 }
  0x11   :  { %v111_v15 = vrot.slane %v110_v11, 2  ;;  %v117_v16 = vrot.slane %v116_v12, 2  ;;  %v181_v43 = vsub.s32 2, %v393_v39  ;;  %v185_v44 = vsub.s32 3, %v393_v39 }
  0x12   :  { %v123_v17 = vrot.slane %v122_v13, 2  ;;  %v129_v18 = vrot.slane %v128_v14, 2  ;;  %v174_v45 = vrot.slane %v399_v41, %v173_v40  ;;  %v178_v46 = vrot.slane %v399_v41, %v177_v42 }
  0x13   :  { %v112_v19 = vmax.f32 %v110_v11, %v111_v15  ;;  %v118_v20 = vmax.f32 %v116_v12, %v117_v16  ;;  %v182_v47 = vrot.slane %v399_v41, %v181_v43  ;;  %v186_v48 = vrot.slane %v399_v41, %v185_v44 }
  0x14   :  { %v124_v21 = vmax.f32 %v122_v13, %v123_v17  ;;  %v130_v22 = vmax.f32 %v128_v14, %v129_v18  ;;  %vm187_vm1 = vcmp.eq.s32.totalorder %v393_v39, %v174_v45  ;;  %vm188_vm2 = vcmp.eq.s32.totalorder %v393_v39, %v178_v46 }
  0x15   :  { %v113_v23 = vrot.slane %v112_v19, 1  ;;  %v119_v24 = vrot.slane %v118_v20, 1  ;;  %vm189_vm3 = vcmp.eq.s32.totalorder %v393_v39, %v182_v47  ;;  %vm190_vm4 = vcmp.eq.s32.totalorder %v393_v39, %v186_v48 }
  0x16   :  { %v125_v25 = vrot.slane %v124_v21, 1  ;;  %v131_v26 = vrot.slane %v130_v22, 1 }
  0x17   :  { %v114_v27 = vmax.f32 %v112_v19, %v113_v23  ;;  %v120_v28 = vmax.f32 %v118_v20, %v119_v24 }
  0x18   :  { %v126_v29 = vmax.f32 %v124_v21, %v125_v25  ;;  %v132_v30 = vmax.f32 %v130_v22, %v131_v26  ;;  %v367_v21 = vmov 1966171168  }
  0x19   :  { %v133_v31 = vsub.f32 %v57_v3, %v114_v27  ;;  %v134_v32 = vsub.f32 %v58_v4, %v120_v28  ;;  %v86_v22 = vunpack.c.l.s4 %v367_v21 }
  0x1a   :  { %v135_v33 = vsub.f32 %v59_v5, %v126_v29  ;;  %v136_v34 = vsub.f32 %v60_v6, %v132_v30 }
  0x1b   :  { %v137_v35 = vmul.f32 1.442695, %v133_v31  ;;  %v139_v36 = vmul.f32 1.442695, %v134_v32  ;;  %v191_v54 = vsel %vm187_vm1, %v133_v31, 0.0  ;;  %v192_v58 = vsel %vm188_vm2, %v134_v32, 0.0 }
  0x1c   :  { %v141_v37 = vmul.f32 1.442695, %v135_v33  ;;  %v143_v38 = vmul.f32 1.442695, %v136_v34  ;;  %v193_v61 = vsel %vm189_vm3, %v135_v33, 0.0  ;;  %v194_v0 = vsel %vm190_vm4, %v136_v34, 0.0 }
  0x1d   :  { %327 = vpow2.f32 %v137_v35  ;;  %v195_v2 = vrot.slane %v191_v54, 4  ;;  %v201_v5 = vrot.slane %v192_v58, 4  ;;  %v207_v8 = vrot.slane %v193_v61, 4 }
  0x1e   :  { %329 = vpow2.f32 %v139_v36  ;;  %v213_v11 = vrot.slane %v194_v0, 4  ;;  %v87_v31 = vunpack.c.0.s8 %v86_v22  ;;  %v368_v36 = vmov 1  }
  0x1f   :  { %331 = vpow2.f32 %v141_v37  ;;  %v196_v14 = vadd.f32 %v195_v2, %v191_v54  ;;  %v202_v17 = vadd.f32 %v201_v5, %v192_v58  ;;  %v208_v20 = vadd.f32 %v207_v8, %v193_v61 }
  0x20   :  { %333 = vpow2.f32 %v143_v38  ;;  %v214_v25 = vadd.f32 %v213_v11, %v194_v0  ;;  %v83_v37 = vcombine.low %v368_v36, %v368_v36  ;;  %v90_v38 = vsub.s32 %v87_v31, %v393_v39  ;;  %v231_v11 = vld [vmem:[#allocation2] sm:$0xf] }
  0x21   :  { %v197_v27 = vrot.slane %v196_v14, 2  ;;  %v203_v29 = vrot.slane %v202_v17, 2  ;;  %v209_v30 = vrot.slane %v208_v20, 2 }
  0x22   :  { %v215_v32 = vrot.slane %v214_v25, 2 }
  0x23   :  { %v198_v33 = vadd.f32 %v197_v27, %v196_v14  ;;  %v204_v34 = vadd.f32 %v203_v29, %v202_v17  ;;  %v210_v35 = vadd.f32 %v209_v30, %v208_v20 }
  0x24   :  { %v216_v45 = vadd.f32 %v215_v32, %v214_v25 }
  0x25   :  { %v199_v46 = vrot.slane %v198_v33, 1  ;;  %v205_v47 = vrot.slane %v204_v34, 1  ;;  %v211_v48 = vrot.slane %v210_v35, 1 }
  0x2a   :  { %v328_v49 = vpop.eup %327 }
  0x2b   :  { %v330_v50 = vpop.eup %329  ;;  %v145_v51 = vrot.slane %v328_v49, 4 }
  0x2c   :  { %v332_v52 = vpop.eup %331  ;;  %v151_v53 = vrot.slane %v330_v50, 4 }
  0x2d   :  { %v334_v55 = vpop.eup %333  ;;  %v146_v56 = vadd.f32 %v328_v49, %v145_v51  ;;  %v157_v57 = vrot.slane %v332_v52, 4  ;;  %v91_v49 = vrot.slane %v83_v37, %v90_v38  ;;  %v200_v51 = vadd.f32 %v199_v46, %v198_v33 }
  0x2e   :  { %v152_v59 = vadd.f32 %v330_v50, %v151_v53  ;;  %v163_v60 = vrot.slane %v334_v55, 4  ;;  %v217_v50 = vrot.slane %v216_v45, 1  ;;  %v206_v53 = vadd.f32 %v205_v47, %v204_v34 }
  0x2f   :  { %v147_v62 = vrot.slane %v146_v56, 2  ;;  %v158_v63 = vadd.f32 %v332_v52, %v157_v57  ;;  %v99_v58 = vcombine.low %v91_v49, %v91_v49 }
  0x30   :  { %v153_v3 = vrot.slane %v152_v59, 2  ;;  %v164_v4 = vadd.f32 %v334_v55, %v163_v60  ;;  %v212_v55 = vadd.f32 %v211_v48, %v210_v35 }
  0x31   :  { %v148_v6 = vadd.f32 %v147_v62, %v146_v56  ;;  %v159_v7 = vrot.slane %v158_v63, 2 }
  0x32   :  { %v154_v9 = vadd.f32 %v153_v3, %v152_v59  ;;  %v165_v10 = vrot.slane %v164_v4, 2  ;;  %v218_v59 = vadd.f32 %v217_v50, %v216_v45 }
  0x33   :  { %v149_v12 = vrot.slane %v148_v6, 1  ;;  %v160_v13 = vadd.f32 %v159_v7, %v158_v63 }
  0x34   :  { %v155_v15 = vrot.slane %v154_v9, 1  ;;  %v166_v16 = vadd.f32 %v165_v10, %v164_v4  ;;  %v106_v4 = vrot.slane %v99_v58, %v90_v38 }
  0x35   :  { %v150_v18 = vadd.f32 %v149_v12, %v148_v6  ;;  %v161_v19 = vrot.slane %v160_v13, 1 }
  0x36   :  { %v156_v23 = vadd.f32 %v155_v15, %v154_v9  ;;  %v167_v24 = vrot.slane %v166_v16, 1  ;;  %vm107_vm6 = vcmp.ne.s32.totalorder %v106_v4, 0 }
  0x37   :  { %v162_v26 = vadd.f32 %v161_v19, %v160_v13  ;;  %335 = vlog2.f32 %v150_v18  ;;  %vm108_vm7 = vmand %vm69_vm5, %vm107_vm6 }
  0x38   :  { %v168_v28 = vadd.f32 %v167_v24, %v166_v16  ;;  %337 = vlog2.f32 %v156_v23 }
  0x39   :  { %339 = vlog2.f32 %v162_v26 }
  0x3a   :  { %341 = vlog2.f32 %v168_v28 }
  0x44   :  { %v336_v52 = vpop.eup %335 }
  0x45   :  { %v338_v54 = vpop.eup %337  ;;  %v220_v56 = vmul.f32 0.6931472, %v336_v52 }
  0x46   :  { %v340_v57 = vpop.eup %339  ;;  %v222_v60 = vmul.f32 0.6931472, %v338_v54 }
  0x47   :  { %v342_v61 = vpop.eup %341  ;;  %v224_v62 = vmul.f32 0.6931472, %v340_v57  ;;  %v227_v63 = vsub.f32 %v220_v56, %v200_v51 }
  0x48   :  { %v226_v0 = vmul.f32 0.6931472, %v342_v61  ;;  %v228_v2 = vsub.f32 %v222_v60, %v206_v53 }
  0x49   :  { %v229_v3 = vsub.f32 %v224_v62, %v212_v55 }
  0x4a   :  { %v230_v5 = vsub.f32 %v226_v0, %v218_v59  ;;  %v236_v6 = vcombine.low %v227_v63, %v228_v2 }
  0x4c   :  { %v237_v7 = vcombine.low %v229_v3, %v230_v5  ;;  %v244_v8 = vrot.slane %v236_v6, %v90_v38 }
  0x4e   :  { %v251_v9 = vrot.slane %v237_v7, %v90_v38 }
  0x50   :  { %v252_v10 = vcombine.low %v244_v8, %v251_v9 }
  0x52   :  { %v259_v12 = vrot.slane %v252_v10, %v90_v38 }
  0x54   :  { %v261_v13 = vsel %vm108_vm7, %v259_v12, 0.0 }
  0x55   :  { %v262_v14 = vadd.f32 %v261_v13, %v231_v11 }
  0x57   :  { %267 = vst.msk [vmem:[#allocation2] sm:$0xf] %vm387_vm0, %v262_v14 }
  0x5e   :  { %v271_v15 = vld [vmem:[#allocation2] sm:$0xf] }
  0x5f   :  { %v276_v16 = vrot.slane %v271_v15, %v173_v40  ;;  %v280_v17 = vrot.slane %v271_v15, %v177_v42  ;;  %v284_v41 = vrot.slane %v271_v15, %v181_v43  ;;  %v288_v18 = vrot.slane %v271_v15, %v185_v44 }
  0x61   :  { %v294_v19 = vsel %vm293_vm8, %v276_v16, 0.0  ;;  %v295_v20 = vsel %vm293_vm8, %v280_v17, 0.0  ;;  %v297_v21 = vsel %vm293_vm8, %v284_v41, 0.0  ;;  %v299_v1 = vsel %vm293_vm8, %v288_v18, 0.0 }
  0x62   :  { %v296_v22 = vadd.f32 %v295_v20, %v294_v19 }
  0x64   :  { %v298_v23 = vadd.f32 %v297_v21, %v296_v22 }
  0x66   :  { %v300_v24 = vadd.f32 %v299_v1, %v298_v23 }
  0x68   :  { %301 = vadd.xlane.f32.xlu0 %v300_v24 }
  0xf1   :  { %v302_v25 = vpop.xlane.xlu0 %301 }
  0xf2   :  { %v303_v26 = vrot.slane %v302_v25, 4 }
  0xf4   :  { %v304_v40 = vadd.f32 %v303_v26, %v302_v25 }
  0xf6   :  { %v305_v27 = vrot.slane %v304_v40, 2 }
  0xf8   :  { %v306_v28 = vadd.f32 %v305_v27, %v304_v40 }
  0xfa   :  { %v307_v42 = vrot.slane %v306_v28, 1 }
  0xfc   :  { %v308_v29 = vadd.f32 %v307_v42, %v306_v28 }
  0xfe   :  { %321 = vpush %v308_v29 }
 0x12f   :  { %s322_s1 = spop %321 }
 0x130   :  { %v310_v43 = vstv %s322_s1 }
 0x131   :  { %312 = vst [vmem:[%s437_s2] sm:$0xff] %v310_v43 }
 0x132   :  { %317 = vsyncpa [#allocation4], 1 }

</bundles_post_ra>
